<compile_context>
chip_gen: v6e
topology: v6e:2x2x1
jax: 0.10.0
libtpu: 0.0.40
codegen_flags: <defaults>
</compile_context>

<pallas_src>
import functools

import jax
import jax.numpy as jnp
from jax import lax
from jax.experimental import pallas as pl
from jax.experimental.pallas import tpu as pltpu


def _round_up(x, m):
    return (x + m - 1) // m * m


# ---------------------------------------------------------------------------
# Pass 1: conv-as-matmul (MXU, bf16 in / f32 acc) + per-tile BN partial stats
# ---------------------------------------------------------------------------
def conv_stats_kernel(p_ref, w_ref, y_ref, stats_ref):
    # [TM, Kp] @ [Kp, Coutp] -> [TM, Coutp] f32 on the MXU.
    y = jnp.dot(p_ref[...], w_ref[...], preferred_element_type=jnp.float32)
    y_ref[...] = y

    coutp = y.shape[1]
    psum = jnp.sum(y, axis=0, keepdims=True)          # [1, Coutp]
    psq = jnp.sum(y * y, axis=0, keepdims=True)       # [1, Coutp]
    # Per-tile partial stats block: row 0 = sum, row 1 = sum of squares, rest 0.
    rows = lax.broadcasted_iota(jnp.int32, (8, coutp), 0)
    stats_ref[...] = jnp.where(
        rows == 0, jnp.broadcast_to(psum, (8, coutp)),
        jnp.where(rows == 1, jnp.broadcast_to(psq, (8, coutp)), 0.0))


# ---------------------------------------------------------------------------
# Pass 2: lane-dense affine (scale/shift fold of BN or bias) + optional ReLU
# ---------------------------------------------------------------------------
def scale_shift_relu_kernel(y_ref, scale_ref, shift_ref, o_ref, *, use_relu):
    out = y_ref[...] * scale_ref[...] + shift_ref[...]
    if use_relu:
        out = jnp.maximum(out, 0.0)
    o_ref[...] = out.astype(o_ref.dtype)


# ---------------------------------------------------------------------------
# Unit3D forward wrapper: SAME-style padding + im2col glue in JAX, compute in Pallas
# ---------------------------------------------------------------------------
def compute_pad(dim, s, kernel_shape, stride):
    if s % stride[dim] == 0:
        return max(kernel_shape[dim] - stride[dim], 0)
    return max(kernel_shape[dim] - s % stride[dim], 0)


def unit3d_forward(x, weight, gamma, beta, *, kernel_shape, stride,
                   eps=0.001, use_batch_norm=True, use_relu=True, bias=None,
                   block_m=256, compute_dtype=jnp.bfloat16):
    """x: [N, Cin, T, H, W]; weight: [Cout, Cin, kt, kh, kw] (PyTorch layout)."""
    n, cin, t, h, w = x.shape
    cout = weight.shape[0]
    kt, kh, kw = kernel_shape
    st, sh, sw = stride

    # --- SAME-style padding exactly as Unit3D.compute_pad / F.pad ---
    pad_t = compute_pad(0, t, kernel_shape, stride)
    pad_h = compute_pad(1, h, kernel_shape, stride)
    pad_w = compute_pad(2, w, kernel_shape, stride)
    pt_f, pt_b = pad_t // 2, pad_t - pad_t // 2
    ph_f, ph_b = pad_h // 2, pad_h - pad_h // 2
    pw_f, pw_b = pad_w // 2, pad_w - pad_w // 2
    xp = jnp.pad(x, ((0, 0), (0, 0), (pt_f, pt_b), (ph_f, ph_b), (pw_f, pw_b)))

    tp, hp, wp = xp.shape[2], xp.shape[3], xp.shape[4]
    to = (tp - kt) // st + 1
    ho = (hp - kh) // sh + 1
    wo = (wp - kw) // sw + 1

    # --- im2col (channels-last; K ordering = (Cin major, (kt,kh,kw) minor) to match
    #     the PyTorch weight.reshape(Cout, -1) flatten) ---
    xp_cl = jnp.transpose(xp, (0, 2, 3, 4, 1))          # [N, Tp, Hp, Wp, Cin]
    cols = []
    for dt in range(kt):
        for dh in range(kh):
            for dw in range(kw):
                cols.append(
                    xp_cl[:, dt:dt + to * st:st, dh:dh + ho * sh:sh, dw:dw + wo * sw:sw, :])
    m = n * to * ho * wo
    k = cin * kt * kh * kw
    patches = jnp.stack(cols, axis=-1).reshape(m, k)     # [M, K]

    w_mat = weight.reshape(cout, k).T                    # [K, Cout]

    # --- padding: K -> multiple of 128 (lanes), Cout -> lane-dense >=128, M -> tiles ---
    block_m = max(16, _round_up(block_m, 16))
    kp = _round_up(k, 128)
    coutp = _round_up(max(cout, 128), 128)   # 128-wide output tiles already saturate v5e MXU
    mp = _round_up(m, block_m)
    nm = mp // block_m

    itemsize = jnp.dtype(compute_dtype).itemsize
    patches = jnp.pad(patches, ((0, mp - m), (0, kp - k))).astype(compute_dtype)
    w_mat = jnp.pad(w_mat, ((0, kp - k), (0, coutp - cout))).astype(compute_dtype)

    # --- pass 1: tiled conv matmul + per-tile partial BN stats ---
    vmem1 = (2 * block_m * kp * itemsize        # double-buffered patch tiles
             + kp * coutp * itemsize            # resident weight
             + 2 * block_m * coutp * 4          # double-buffered y tiles
             + 2 * 8 * coutp * 4)               # stats tiles
    vmem1 = int(min(max(2 * vmem1, 4 << 20), 64 << 20))

    y_conv, stats = pl.pallas_call(
        conv_stats_kernel,
        out_shape=(jax.ShapeDtypeStruct((mp, coutp), jnp.float32),
                   jax.ShapeDtypeStruct((nm, 8, coutp), jnp.float32)),
        grid=(nm,),
        in_specs=[
            pl.BlockSpec((block_m, kp), lambda i: (i, 0)),
            pl.BlockSpec((kp, coutp), lambda i: (0, 0)),     # weight resident in VMEM
        ],
        out_specs=(
            pl.BlockSpec((block_m, coutp), lambda i: (i, 0)),
            pl.BlockSpec((None, 8, coutp), lambda i: (i, 0, 0)),
        ),
        compiler_params=pltpu.CompilerParams(
            dimension_semantics=("parallel",),   # per-tile stats -> cross-core safe (v7x)
            vmem_limit_bytes=vmem1),
        cost_estimate=pl.CostEstimate(
            flops=2 * mp * kp * coutp,
            transcendentals=0,
            bytes_accessed=(mp * kp * itemsize + kp * coutp * itemsize
                            + mp * coutp * 4 + nm * 8 * coutp * 4)),
    )(patches, w_mat)

    # --- tiny XLA reduction of per-tile partials -> fold BN into scale/shift ---
    stats_sum = jnp.sum(stats, axis=0)                   # [8, Coutp]
    s1 = stats_sum[0:1, :]                               # sum(y)
    s2 = stats_sum[1:2, :]                               # sum(y^2)
    inv_m = 1.0 / float(m)                               # true M (padded rows are zero)
    mean = s1 * inv_m
    var = jnp.maximum(s2 * inv_m - mean * mean, 0.0)

    gamma_p = jnp.pad(gamma.astype(jnp.float32).reshape(1, cout), ((0, 0), (0, coutp - cout)))
    beta_p = jnp.pad(beta.astype(jnp.float32).reshape(1, cout), ((0, 0), (0, coutp - cout)))

    if use_batch_norm:
        inv = lax.rsqrt(var + eps)
        scale = gamma_p * inv
        shift = beta_p - mean * scale
        # (a conv bias would be a no-op under train-mode BN, so it is ignored here)
    else:
        scale = jnp.ones((1, coutp), jnp.float32)
        if bias is not None:
            shift = jnp.pad(bias.astype(jnp.float32).reshape(1, cout),
                            ((0, 0), (0, coutp - cout)))
        else:
            shift = jnp.zeros((1, coutp), jnp.float32)

    # --- pass 2: lane-dense BN-apply / bias + ReLU, fully parallel over M tiles ---
    vmem2 = int(min(max(2 * (4 * block_m * coutp * 4 + 4 * coutp * 4), 4 << 20), 64 << 20))
    out_flat = pl.pallas_call(
        functools.partial(scale_shift_relu_kernel, use_relu=use_relu),
        out_shape=jax.ShapeDtypeStruct((mp, coutp), jnp.float32),
        grid=(nm,),
        in_specs=[
            pl.BlockSpec((block_m, coutp), lambda i: (i, 0)),
            pl.BlockSpec((1, coutp), lambda i: (0, 0)),
            pl.BlockSpec((1, coutp), lambda i: (0, 0)),
        ],
        out_specs=pl.BlockSpec((block_m, coutp), lambda i: (i, 0)),
        compiler_params=pltpu.CompilerParams(
            dimension_semantics=("parallel",),
            vmem_limit_bytes=vmem2),
        cost_estimate=pl.CostEstimate(
            flops=2 * mp * coutp, transcendentals=0,
            bytes_accessed=2 * mp * coutp * 4 + 2 * coutp * 4),
    )(y_conv, scale, shift)

    # [Mp, Coutp] -> [M, Cout] -> [N, To, Ho, Wo, Cout] -> NCDHW
    out = out_flat[:m, :cout].reshape(n, to, ho, wo, cout).transpose(0, 4, 1, 2, 3)
    return out


# ---------------------------------------------------------------------------
# Pure-JAX reference (same bf16 input quantization; f32-accurate conv) for sanity check
# ---------------------------------------------------------------------------
def unit3d_reference(x, weight, gamma, beta, *, kernel_shape, stride, eps=0.001,
                     compute_dtype=jnp.bfloat16):
    xq = x.astype(compute_dtype).astype(jnp.float32)
    wq = weight.astype(compute_dtype).astype(jnp.float32)
    kt, kh, kw = kernel_shape
    t, h, w = x.shape[2], x.shape[3], x.shape[4]
    pad_t = compute_pad(0, t, kernel_shape, stride)
    pad_h = compute_pad(1, h, kernel_shape, stride)
    pad_w = compute_pad(2, w, kernel_shape, stride)
    xp = jnp.pad(xq, ((0, 0), (0, 0),
                      (pad_t // 2, pad_t - pad_t // 2),
                      (pad_h // 2, pad_h - pad_h // 2),
                      (pad_w // 2, pad_w - pad_w // 2)))
    y = lax.conv_general_dilated(
        xp, wq, window_strides=stride, padding="VALID",
        dimension_numbers=("NCDHW", "OIDHW", "NCDHW"),
        precision=lax.Precision.HIGHEST)
    mean = jnp.mean(y, axis=(0, 2, 3, 4), keepdims=True)
    var = jnp.mean((y - mean) ** 2, axis=(0, 2, 3, 4), keepdims=True)
    y = (y - mean) * lax.rsqrt(var + eps)
    y = y * gamma.reshape(1, -1, 1, 1, 1) + beta.reshape(1, -1, 1, 1, 1)
    return jnp.maximum(y, 0.0)


if __name__ == "__main__":
    # Small Unit3D config: in_channels=4, output_channels=8, kernel 3x3x3, stride 1,
    # use_batch_norm=True, use_bias=False, activation=ReLU (PyTorch defaults).
    # M = 2*8*14*14 = 3136 -> 13 tiles of 256 (ragged last tile exercises zero-row masking).
    N, CIN, T, H, W = 2, 4, 8, 14, 14
    COUT = 8
    KERNEL = (3, 3, 3)
    STRIDE = (1, 1, 1)

    key = jax.random.PRNGKey(0)
    kx, kw_, kg, kb = jax.random.split(key, 4)
    x = jax.random.normal(kx, (N, CIN, T, H, W), dtype=jnp.float32)
    weight = jax.random.normal(kw_, (COUT, CIN) + KERNEL, dtype=jnp.float32) * 0.1
    gamma = 1.0 + 0.1 * jax.random.normal(kg, (COUT,), dtype=jnp.float32)
    beta = 0.1 * jax.random.normal(kb, (COUT,), dtype=jnp.float32)

    out = unit3d_forward(x, weight, gamma, beta,
                         kernel_shape=KERNEL, stride=STRIDE, block_m=256)
    out = jax.block_until_ready(out)

    ref = unit3d_reference(x, weight, gamma, beta,
                           kernel_shape=KERNEL, stride=STRIDE)
    assert out.shape == (N, COUT, T, H, W), out.shape
    max_err = float(jnp.max(jnp.abs(out - ref)))
    assert jnp.allclose(out, ref, atol=5e-4, rtol=5e-4), max_err

    print("KERNEL_OK")
</pallas_src>

<mosaic_0001>
module attributes {stable_mosaic.version = 11 : i64} {
  func.func @conv_stats_kernel(%arg0: i32, %arg1: memref<256x128xbf16, #tpu.memory_space<vmem>>, %arg2: memref<128x128xbf16, #tpu.memory_space<vmem>>, %arg3: memref<256x128xf32, #tpu.memory_space<vmem>>, %arg4: memref<1x8x128xf32, #tpu.memory_space<vmem>>) attributes {dimension_semantics = [#tpu.dimension_semantics<parallel>], iteration_bounds = array<i64: 13>, scalar_prefetch = 0 : i64, scratch_operands = 0 : i64, tpu.core_type = #tpu.core_type<tc>, window_params = [{transform_indices = @transform_0, window_bounds = array<i64: 256, 128>}, {pipeline_mode = #tpu.pipeline_mode<synchronous>, transform_indices = @transform_1, window_bounds = array<i64: 128, 128>}, {transform_indices = @transform_2, window_bounds = array<i64: 256, 128>}, {transform_indices = @transform_3, window_bounds = array<i64: 1, 8, 128>}]} {
    %c0 = arith.constant 0 : index
    %c0_0 = arith.constant 0 : index
    %0 = vector.load %arg1[%c0, %c0_0] : memref<256x128xbf16, #tpu.memory_space<vmem>>, vector<256x128xbf16>
    %c0_1 = arith.constant 0 : index
    %c0_2 = arith.constant 0 : index
    %1 = vector.load %arg2[%c0_1, %c0_2] : memref<128x128xbf16, #tpu.memory_space<vmem>>, vector<128x128xbf16>
    %cst = arith.constant dense<0.000000e+00> : vector<256x128xf32>
    %2 = tpu.matmul %0, %1, %cst {dimension_numbers = #tpu.dot_dimension_numbers<[1], [0], [0], [1], [0, 0, 1, 1], [], []>} : vector<256x128xbf16>, vector<128x128xbf16>, vector<256x128xf32> -> vector<256x128xf32>
    %c0_3 = arith.constant 0 : index
    %c0_4 = arith.constant 0 : index
    %3 = vector.load %arg3[%c0_3, %c0_4] : memref<256x128xf32, #tpu.memory_space<vmem>>, vector<256x128xf32>
    tpu.vector_store %arg3[%c0_3, %c0_4], %2 {strides = array<i32>} : memref<256x128xf32, #tpu.memory_space<vmem>>, vector<256x128xf32>,
    %cst_5 = arith.constant dense<0.000000e+00> : vector<128xf32>
    %4 = vector.multi_reduction <add>, %2, %cst_5 [0] : vector<256x128xf32> to vector<128xf32>
    %5 = vector.shape_cast %4 : vector<128xf32> to vector<1x128xf32>
    %6 = arith.mulf %2, %2 : vector<256x128xf32>
    %cst_6 = arith.constant dense<0.000000e+00> : vector<128xf32>
    %7 = vector.multi_reduction <add>, %6, %cst_6 [0] : vector<256x128xf32> to vector<128xf32>
    %8 = vector.shape_cast %7 : vector<128xf32> to vector<1x128xf32>
    %9 = tpu.iota {dimensions = array<i32: 0>} : vector<8x128xi32>
    %c0_i32 = arith.constant 0 : i32
    %10 = vector.broadcast %c0_i32 : i32 to vector<8x128xi32>
    %11 = arith.cmpi eq, %9, %10 : vector<8x128xi32>
    %12 = vector.shape_cast %5 : vector<1x128xf32> to vector<1x128xf32>
    %13 = vector.broadcast %12 : vector<1x128xf32> to vector<8x128xf32>
    %c1_i32 = arith.constant 1 : i32
    %14 = vector.broadcast %c1_i32 : i32 to vector<8x128xi32>
    %15 = arith.cmpi eq, %9, %14 : vector<8x128xi32>
    %16 = vector.shape_cast %8 : vector<1x128xf32> to vector<1x128xf32>
    %17 = vector.broadcast %16 : vector<1x128xf32> to vector<8x128xf32>
    %cst_7 = arith.constant 0.000000e+00 : f32
    %18 = vector.broadcast %cst_7 : f32 to vector<8x128xf32>
    %19 = arith.select %15, %17, %18 : vector<8x128xi1>, vector<8x128xf32>
    %20 = arith.select %11, %13, %19 : vector<8x128xi1>, vector<8x128xf32>
    %c0_8 = arith.constant 0 : index
    %c0_9 = arith.constant 0 : index
    %c0_10 = arith.constant 0 : index
    %21 = vector.load %arg4[%c0_8, %c0_9, %c0_10] : memref<1x8x128xf32, #tpu.memory_space<vmem>>, vector<1x8x128xf32>
    %22 = vector.shape_cast %21 : vector<1x8x128xf32> to vector<8x128xf32>
    %23 = vector.shape_cast %20 : vector<8x128xf32> to vector<1x8x128xf32>
    tpu.vector_store %arg4[%c0_8, %c0_9, %c0_10], %23 {strides = array<i32>} : memref<1x8x128xf32, #tpu.memory_space<vmem>>, vector<1x8x128xf32>,
    return
  }
  func.func @transform_0(%arg0: i32) -> (i32, i32) {
    %c0_i32 = arith.constant 0 : i32
    %c0_i32_0 = arith.constant 0 : i32
    return %arg0, %c0_i32 : i32, i32
  }
  func.func @transform_1(%arg0: i32) -> (i32, i32) {
    %c0_i32 = arith.constant 0 : i32
    %c0_i32_0 = arith.constant 0 : i32
    %c0_i32_1 = arith.constant 0 : i32
    return %c0_i32, %c0_i32_0 : i32, i32
  }
  func.func @transform_2(%arg0: i32) -> (i32, i32) {
    %c0_i32 = arith.constant 0 : i32
    %c0_i32_0 = arith.constant 0 : i32
    return %arg0, %c0_i32 : i32, i32
  }
  func.func @transform_3(%arg0: i32) -> (i32, i32, i32) {
    %c0_i32 = arith.constant 0 : i32
    %c0_i32_0 = arith.constant 0 : i32
    %c0_i32_1 = arith.constant 0 : i32
    return %arg0, %c0_i32, %c0_i32_0 : i32, i32, i32
  }
}

</mosaic_0001>

<bundles_post_ra>
// kernel: tpu_custom_call.1
= control target key start
LH: loop header
LB: loop body
LE: loop exit
PB: predicated region body
PF: predicated region fallthrough
CT: control target
= control target key end

     0   :  { %9 = vsyncpa [#allocation3], 0  ;;  %s1623_s0 = inlined_call_operand.hbm [shape: bf16[3328,128], index: 0, kind: input, shape index: {}]   ;;  %s1624_s1 = inlined_call_operand.hbm [shape: bf16[128,128], index: 1, kind: input, shape index: {}]   ;;  %s1625_s2 = inlined_call_operand.hbm [shape: f32[3328,128], index: 2, kind: output, shape index: {0}]   ;;  %s1626_s3 = inlined_call_operand.hbm [shape: f32[13,8,128], index: 3, kind: output, shape index: {1}]  }
   0x1   :  { %11 = vsyncpa [#allocation3 + $0x1], 0 }
   0x2   :  { %12 = vsyncpa [#allocation6], 0 }
   0x3   :  { %13 = vsyncpa [#allocation4], 0 }
   0x4   :  { %15 = vsyncpa [#allocation4 + $0x1], 0 }
   0x5   :  { %16 = vsyncpa [#allocation9], 0 }
   0x6   :  { %18 = vsyncpa [#allocation9 + $0x1], 0  ;;  %s1268_s12 = smov 0   ;;  %s1270_s13 = smov 0  }
   0x7   :  { %s1272_s14 = smov 0   ;;  %s1274_s15 = smov 0  }
   0x8 LB: > { %s1289_s16 = sadd.s32 4294967295, %s1238_s15   ;;  %s863_s17 = sadd.s32 4294967294, %s1238_s15   ;;  %s1238_s15 = sphi %s1274_s15, %s1647_s15   ;;  %s1234_s14 = sphi %s1272_s14, %s1646_s14   ;;  %s1230_s13 = sphi %s1270_s13, %s1645_s13   ;;  %s1226_s12 = sphi %s1268_s12, %s1644_s12  }
   0x9   : > { %p44_p0 = scmp.ne.s32.totalorder %s1230_s13, %s1226_s12  ;;  %p1627_p1 = scmp.eq.s32.totalorder %s1289_s16, 0 }
   0xa   : > { %p95_p3 = scmp.eq.s32.totalorder %s863_s17, 12  ;;  %p864_p5 = scmp.ge.s32.totalorder %s1238_s15, 1 }
   0xb   : > { %p1298_p4 = por %p1627_p1, %p44_p0  ;;  %p128_p7 = scmp.lt.s32.totalorder %s1238_s15, 14 }
   0xc   : > { %p1303_p6 = por %p95_p3, %p44_p0  ;;  %s1240_s21 = smov [#allocation5]  }
   0xd   : > { %s1631_s18 = scalar_select %p1298_p4, 1, 0 }
   0xe   : > { %s1632_s19 = scalar_select %p1303_p6, 1, 0 }
   0xf   : > { %p1308_p8 = pnand %p864_p5, %p128_p7  ;;  %s140_s22 = sshll.u32 %s1240_s21, 4  ;;  %s141_s22 = int_to_ptr.vmem [resolvable:$true] %s140_s22 }
  0x10   : > { %s1321_s24 = sadd.s32 1, %s1238_s15   ;;  %s31_s25 = sadd.s32 1, %s1234_s14 }
  0x11   : > { %s1633_s20 = scalar_select %p1308_p8, 1, 0 }
  0x12   : > { %p1006_p9 = pneg %p1308_p8  ;;  %s28_s26 = ssub.s32 %s1238_s15, %s1321_s24 }
  0x13   : > { %s1097_s27 = scalar_lea.vmem %s141_s22, 1024  ;;  %p1105_p3 = scmp.lt.s32.totalorder %s141_s22, %s141_s22 }
  0x14   : > { %p1316_p10 = pnand %p1006_p9, %p1627_p1  ;;  %p1098_p12 = scmp.ne.s32.totalorder %s141_s22, %s1097_s27 }
  0x15   : > { %p1106_p5 = scmp.lt.s32.totalorder %s1097_s27, %s1097_s27 }
  0x16   : > { %p1088_p11 = pneg %p1316_p10 }
  0x17   : > { %p1107_p7 = por %p1106_p5, %p1105_p3 }
  0x18   : > { %p1100_p13 = pnand %p1098_p12, %p1088_p11 }
  0x1a   : > { %p1101_p0 = pneg %p1100_p13 }
  0x1c   : > { %p1108_p2 = pnand %p1107_p7, %p1101_p0 }
  0x1e   : > { %1111 = shalt.err (!%p1108_p2)
}
  0x1f   : > { %s1241_s28 = smov 64   ;;  %s1242_s29 = smov 4  }
  0x20   : > { %1009 = dma.hbm_to_vmem [thread:$0]  (!%p1316_p10), %s1624_s1, 1024, %s141_s22, [#allocation6], %s1241_s28, %s1241_s28, %s1242_s29  }
  0x21   : > { %p29_p2 = scmp.eq.s32.totalorder %s28_s26, 0  ;;  %p38_p9 = scmp.ne.s32.totalorder %s1234_s14, %s1230_s13 }
  0x22   : > { %p39_p11 = scmp.eq.s32.totalorder %s1238_s15, 0  ;;  %p1022_p12 = scmp.lt.s32.totalorder %s1238_s15, 13 }
  0x23   : > { %s1341_s5 = scalar_select %p29_p2, %s1234_s14, %s31_s25  }
  0x24   : > { %p40_p13 = por %p39_p11, %p38_p9  ;;  %p1635_p0 = scmp.eq.s32.totalorder %s1289_s16, 12 }
  0x25   : > { %s154_s7 = sand.u32 1, %s1234_s14   ;;  %s906_s8 = sshll.u32 %s1238_s15, 11 }
  0x26   : > { %p1345_p3 = por %p1635_p0, %p38_p9  ;;  %s867_s9 = sshll.u32 %s154_s7, 7 }
  0x27   : > { %s1354_s17 = scalar_lea.hbm %s1623_s0, %s906_s8  ;;  %s158_s21 = scalar_lea.vmem [#allocation2], %s867_s9 }
  0x28   : > { %s1636_s6 = scalar_select %p1345_p3, 1, 0 }
  0x29   : > { %s165_s22 = sshll.u32 %s158_s21, 4  ;;  %p1356_p10 = pnand %p1022_p12, %p40_p13  ;;  %s1360_s22 = int_to_ptr.vmem [resolvable:$true] %s165_s22 }
  0x2a   : > { %s1362_s25 = scalar_lea.sflag [#allocation3], %s154_s7  ;;  %s1112_s26 = scalar_lea.hbm %s1354_s17, 2048 }
  0x2b   : > { %p1113_p5 = scmp.ne.s32.totalorder %s1354_s17, %s1112_s26  ;;  %p1114_p7 = pneg %p1356_p10 }
  0x2c   : > { %s1117_s4 = scalar_lea.hbm %s1623_s0, 26624  ;;  %p1118_p11 = scmp.lt.s32.totalorder %s1354_s17, %s1623_s0 }
  0x2d   : > { %p1115_p2 = pnand %p1114_p7, %p1113_p5  ;;  %p1119_p12 = scmp.lt.s32.totalorder %s1117_s4, %s1112_s26 }
  0x2f   : > { %p1116_p9 = pneg %p1115_p2  ;;  %p1120_p13 = por %p1119_p12, %p1118_p11 }
  0x31   : > { %p1121_p0 = pnand %p1120_p13, %p1116_p9 }
  0x33   : > { %1124 = shalt.err (!%p1121_p0)
}
  0x34   : > { %s1125_s7 = scalar_lea.vmem %s1360_s22, 2048  ;;  %s1243_s10 = smov [#allocation2]  }
  0x35   : > { %p1126_p1 = scmp.ne.s32.totalorder %s1360_s22, %s1125_s7  ;;  %s1130_s11 = sshll.u32 %s1243_s10, 4  ;;  %s1131_s11 = int_to_ptr.vmem [resolvable:$false] %s1130_s11 }
  0x36   : > { %s1132_s21 = scalar_lea.vmem %s1131_s11, 4096  ;;  %p1133_p2 = scmp.lt.s32.totalorder %s1360_s22, %s1131_s11 }
  0x37   : > { %p1128_p6 = pnand %p1126_p1, %p1114_p7  ;;  %p1134_p3 = scmp.lt.s32.totalorder %s1132_s21, %s1125_s7 }
  0x39   : > { %p1129_p5 = pneg %p1128_p6  ;;  %p1135_p4 = por %p1134_p3, %p1133_p2 }
  0x3b   : > { %p1136_p8 = pnand %p1135_p4, %p1129_p5 }
  0x3d   : > { %1139 = shalt.err (!%p1136_p8)
}
  0x3e   : > { %1013 = dma.hbm_to_vmem [thread:$0]  (!%p1356_p10), %s1354_s17, 2048, %s1360_s22, %s1362_s25, %s1241_s28, %s1241_s28, %s1242_s29  }
  0x3f   : > { %p1638_p1 = scmp.ne.s32.totalorder %s1633_s20, 0 }
  0x40   : > { %s1389_s26 = sand.u32 (!%p1638_p1), 1, %s1230_s13   ;;  %p1639_p4 = scmp.ne.s32.totalorder (!%p1638_p1), %s1631_s18, 0 }
  0x41   : > { %177 = sbr.rel (%p1638_p1) target bundleno = 407 (0x197), region = 28  ;;  %s871_s27 = sshll.u32 (!%p1638_p1), %s1389_s26, 7 }
  0x42   : > { %s180_s30 = scalar_lea.sflag (!%p1638_p1), [#allocation3], %s1389_s26  ;;  %s1393_s4 = scalar_lea.vmem (!%p1638_p1), [#allocation2], %s871_s27 }
  0x46   : > { %1209 = dma.done.wait (%p1639_p4), %s180_s30, 2048  }
  0x47   : > { %1211 = vsyncadd (%p1639_p4), %s180_s30, 4294965248  ;;  %p1640_p6 = scmp.eq.s32.totalorder %s1289_s16, 0 }
  0x49   : > { %1213 = dma.done.wait (%p1640_p6), [#allocation6], 1024   ;;  %p1641_p8 = pmov %p1640_p6 }
  0x4a   : > { %v1062_v0 = vld [vmem:[#allocation5 + $0x38] sm:$0xff]   ;;  %v1063_v1 = vld [vmem:[#allocation5 + $0x30] sm:$0xff]   ;;  %v1064_v2 = vld [vmem:[#allocation5 + $0x28] sm:$0xff]   ;;  %s873_s18 = sshll.u32 %s1389_s26, 8  ;;  %s907_s28 = sshll.u32 %s1289_s16, 12 }
  0x4b   : > { %1215 = vsyncadd (%p1641_p8), [#allocation6], 4294966272  ;;  %932 = vmatprep.subr.bf16.mxu0 %v1062_v0  ;;  %980 = vmatprep.subr.bf16.mxu1 %v1062_v0  ;;  %v1065_v3 = vld [vmem:[#allocation5 + $0x20] sm:$0xff]   ;;  %v1066_v5 = vld [vmem:[#allocation5 + $0x18] sm:$0xff]   ;;  %s1422_s20 = scalar_lea.vmem [#allocation7], %s873_s18  ;;  %s1499_s23 = scalar_lea.hbm %s1625_s2, %s907_s28 }
  0x4c   : > { %933 = vmatpush3.bf16.msra.mxu0 %v1062_v0  ;;  %988 = vmatpush3.bf16.msra.mxu1 %v1062_v0  ;;  %v1070_v4 = vld [vmem:[%s1393_s4] sm:$0xff]   ;;  %v1067_v6 = vld [vmem:[#allocation5 + $0x10] sm:$0xff]   ;;  %v1068_v8 = vld [vmem:[#allocation5 + $0x8] sm:$0xff]   ;;  %s735_s29 = sshll.u32 %s1422_s20, 4  ;;  %s717_s25 = scalar_lea.sflag [#allocation4], %s1389_s26  ;;  %s1501_s29 = int_to_ptr.vmem [resolvable:$true] %s735_s29 }
  0x4d   : > { %934 = vmatprep.subr.bf16.mxu0 %v1063_v1  ;;  %981 = vmatprep.subr.bf16.mxu1 %v1063_v1  ;;  %v1078_v7 = vld [vmem:[%s1393_s4 + $0x40] sm:$0xff]   ;;  %v1071_v10 = vld [vmem:[%s1393_s4 + $0x8] sm:$0xff]   ;;  %v1072_v12 = vld [vmem:[%s1393_s4 + $0x10] sm:$0xff]   ;;  %s1140_s8 = scalar_lea.vmem %s1501_s29, 4096  ;;  %p1642_p10 = scmp.ne.s32.totalorder %s1636_s6, 0 }
  0x4e   : > { %948 = vmatprep.mubr.bf16.mxu0 %v1070_v4  ;;  %964 = vmatprep.mubr.bf16.mxu1 %v1078_v7  ;;  %v1069_v9 = vld [vmem:[#allocation5] sm:$0xff]   ;;  %v1079_v11 = vld [vmem:[%s1393_s4 + $0x48] sm:$0xff]   ;;  %v1080_v13 = vld [vmem:[%s1393_s4 + $0x50] sm:$0xff]   ;;  %p1141_p3 = scmp.ne.s32.totalorder %s1501_s29, %s1140_s8  ;;  %s1244_s9 = smov [#allocation7]  }
  0x4f   : > { %v1073_v14 = vld [vmem:[%s1393_s4 + $0x18] sm:$0xff]   ;;  %v1074_v16 = vld [vmem:[%s1393_s4 + $0x20] sm:$0xff]   ;;  %v1075_v18 = vld [vmem:[%s1393_s4 + $0x28] sm:$0xff]   ;;  %s1144_s7 = sshll.u32 %s1244_s9, 4  ;;  %s1145_s7 = int_to_ptr.vmem [resolvable:$false] %s1144_s7 }
  0x50   : > { %935 = vmatpush3.bf16.msra.mxu0 %v1063_v1  ;;  %989 = vmatpush3.bf16.msra.mxu1 %v1063_v1  ;;  %v1081_v15 = vld [vmem:[%s1393_s4 + $0x58] sm:$0xff]   ;;  %v1082_v17 = vld [vmem:[%s1393_s4 + $0x60] sm:$0xff]   ;;  %v1083_v19 = vld [vmem:[%s1393_s4 + $0x68] sm:$0xff]   ;;  %p1142_p7 = pnand %p1141_p3, %p1642_p10  ;;  %s1146_s10 = scalar_lea.vmem %s1145_s7, 8192 }
  0x51   : > { %936 = vmatprep.subr.bf16.mxu0 %v1064_v2  ;;  %982 = vmatprep.subr.bf16.mxu1 %v1064_v2  ;;  %v1076_v20 = vld [vmem:[%s1393_s4 + $0x30] sm:$0xff]   ;;  %v1077_v22 = vld [vmem:[%s1393_s4 + $0x38] sm:$0xff]   ;;  %p1147_p11 = scmp.lt.s32.totalorder %s1501_s29, %s1145_s7  ;;  %p1148_p12 = scmp.lt.s32.totalorder %s1146_s10, %s1140_s8 }
  0x52   : > { %v1084_v21 = vld [vmem:[%s1393_s4 + $0x70] sm:$0xff]   ;;  %v1085_v23 = vld [vmem:[%s1393_s4 + $0x78] sm:$0xff]   ;;  %p1143_p9 = pneg %p1142_p7 }
  0x53   : > { %p1149_p13 = por %p1148_p12, %p1147_p11 }
  0x54   : > { %937 = vmatpush3.bf16.msra.mxu0 %v1064_v2  ;;  %990 = vmatpush3.bf16.msra.mxu1 %v1064_v2 }
  0x55   : > { %938 = vmatprep.subr.bf16.mxu0 %v1065_v3  ;;  %983 = vmatprep.subr.bf16.mxu1 %v1065_v3  ;;  %p1150_p0 = pnand %p1149_p13, %p1143_p9 }
  0x58   : > { %939 = vmatpush3.bf16.msra.mxu0 %v1065_v3  ;;  %991 = vmatpush3.bf16.msra.mxu1 %v1065_v3 }
  0x59   : > { %940 = vmatprep.subr.bf16.mxu0 %v1066_v5  ;;  %984 = vmatprep.subr.bf16.mxu1 %v1066_v5 }
  0x5c   : > { %941 = vmatpush3.bf16.msra.mxu0 %v1066_v5  ;;  %992 = vmatpush3.bf16.msra.mxu1 %v1066_v5 }
  0x5d   : > { %942 = vmatprep.subr.bf16.mxu0 %v1067_v6  ;;  %985 = vmatprep.subr.bf16.mxu1 %v1067_v6 }
  0x60   : > { %943 = vmatpush3.bf16.msra.mxu0 %v1067_v6  ;;  %993 = vmatpush3.bf16.msra.mxu1 %v1067_v6 }
  0x61   : > { %944 = vmatprep.subr.bf16.mxu0 %v1068_v8  ;;  %986 = vmatprep.subr.bf16.mxu1 %v1068_v8 }
  0x64   : > { %945 = vmatpush3.bf16.msra.mxu0 %v1068_v8  ;;  %994 = vmatpush3.bf16.msra.mxu1 %v1068_v8 }
  0x65   : > { %946 = vmatprep.subr.bf16.mxu0 %v1069_v9  ;;  %987 = vmatprep.subr.bf16.mxu1 %v1069_v9 }
  0x68   : > { %947 = vmatpush3.bf16.msra.mxu0 %v1069_v9  ;;  %995 = vmatpush3.bf16.msra.mxu1 %v1069_v9 }
  0x6b   : > { %949 = vmatmul.mubr.bf16.vlgmr.msra.gmra.mxu0 %v1071_v10  ;;  %965 = vmatmul.mubr.bf16.vlgmr.msra.gmra.mxu1 %v1079_v11 }
  0x6c   : > { %952 = vmatprep.mubr.bf16.mxu0 %v1072_v12  ;;  %968 = vmatprep.mubr.bf16.mxu1 %v1080_v13 }
  0x73   : > { %953 = vmatmul.mubr.bf16.gmra.mxu0 %v1073_v14  ;;  %969 = vmatmul.mubr.bf16.gmra.mxu1 %v1081_v15 }
  0x74   : > { %956 = vmatprep.mubr.bf16.mxu0 %v1074_v16  ;;  %972 = vmatprep.mubr.bf16.mxu1 %v1082_v17 }
  0x7b   : > { %957 = vmatmul.mubr.bf16.gmra.mxu0 %v1075_v18  ;;  %973 = vmatmul.mubr.bf16.gmra.mxu1 %v1083_v19 }
  0x7c   : > { %960 = vmatprep.mubr.bf16.mxu0 %v1076_v20  ;;  %976 = vmatprep.mubr.bf16.mxu1 %v1084_v21 }
  0x83   : > { %961 = vmatmul.mubr.bf16.gmra.mxu0 %v1077_v22  ;;  %977 = vmatmul.mubr.bf16.gmra.mxu1 %v1085_v23 }
 0x12b   : > { %v950_v24 = vpop.f32.mrf.mxu0  ;;  %v1420_v25 = vpop.f32.mrf.mxu1 }
 0x12c   : > { %573 = vst [vmem:[%s1422_s20 + $0x10] sm:$0xff] %v950_v24  ;;  %589 = vst [vmem:[%s1422_s20 + $0x90] sm:$0xff] %v1420_v25  ;;  %v642_v37 = vmul.f32 %v950_v24, %v950_v24 }
 0x12d   : > { %v444_v26 = vpop.f32.mrf.mxu0  ;;  %v1427_v27 = vpop.f32.mrf.mxu1 }
 0x12e   : > { %571 = vst [vmem:[%s1422_s20] sm:$0xff] %v444_v26  ;;  %587 = vst [vmem:[%s1422_s20 + $0x80] sm:$0xff] %v1427_v27  ;;  %v640_v32 = vmul.f32 %v444_v26, %v444_v26 }
 0x12f   : > { %v951_v28 = vpop.f32.mrf.mxu0  ;;  %v1432_v29 = vpop.f32.mrf.mxu1 }
 0x130   : > { %574 = vst [vmem:[%s1422_s20 + $0x18] sm:$0xff] %v951_v28  ;;  %590 = vst [vmem:[%s1422_s20 + $0x98] sm:$0xff] %v1432_v29  ;;  %v643_v42 = vmul.f32 %v951_v28, %v951_v28 }
 0x131   : > { %v447_v30 = vpop.f32.mrf.mxu0  ;;  %v1437_v31 = vpop.f32.mrf.mxu1 }
 0x132   : > { %572 = vst [vmem:[%s1422_s20 + $0x8] sm:$0xff] %v447_v30  ;;  %v603_v33 = vadd.f32 %v447_v30, %v444_v26  ;;  %v641_v34 = vmul.f32 %v447_v30, %v447_v30  ;;  %588 = vst [vmem:[%s1422_s20 + $0x88] sm:$0xff] %v1437_v31 }
 0x133   : > { %v954_v35 = vpop.f32.mrf.mxu0  ;;  %v1442_v36 = vpop.f32.mrf.mxu1 }
 0x134   : > { %v604_v38 = vadd.f32 %v950_v24, %v603_v33  ;;  %v672_v39 = vadd.f32 %v641_v34, %v640_v32  ;;  %577 = vst [vmem:[%s1422_s20 + $0x30] sm:$0xff] %v954_v35  ;;  %593 = vst [vmem:[%s1422_s20 + $0xb0] sm:$0xff] %v1442_v36  ;;  %v646_v57 = vmul.f32 %v954_v35, %v954_v35 }
 0x135   : > { %v460_v40 = vpop.f32.mrf.mxu0  ;;  %v1447_v41 = vpop.f32.mrf.mxu1 }
 0x136   : > { %v673_v43 = vadd.f32 %v672_v39, %v642_v37  ;;  %575 = vst [vmem:[%s1422_s20 + $0x20] sm:$0xff] %v460_v40  ;;  %v605_v44 = vadd.f32 %v951_v28, %v604_v38  ;;  %591 = vst [vmem:[%s1422_s20 + $0xa0] sm:$0xff] %v1447_v41  ;;  %v644_v48 = vmul.f32 %v460_v40, %v460_v40 }
 0x137   : > { %v955_v45 = vpop.f32.mrf.mxu0  ;;  %v1452_v46 = vpop.f32.mrf.mxu1 }
 0x138   : > { %v606_v47 = vadd.f32 %v605_v44, %v460_v40  ;;  %v674_v49 = vadd.f32 %v673_v43, %v643_v42  ;;  %578 = vst [vmem:[%s1422_s20 + $0x38] sm:$0xff] %v955_v45  ;;  %594 = vst [vmem:[%s1422_s20 + $0xb8] sm:$0xff] %v1452_v46  ;;  %v647_v62 = vmul.f32 %v955_v45, %v955_v45 }
 0x139   : > { %v463_v50 = vpop.f32.mrf.mxu0  ;;  %v1457_v51 = vpop.f32.mrf.mxu1 }
 0x13a   : > { %v675_v52 = vadd.f32 %v674_v49, %v644_v48  ;;  %576 = vst [vmem:[%s1422_s20 + $0x28] sm:$0xff] %v463_v50  ;;  %v607_v53 = vadd.f32 %v606_v47, %v463_v50  ;;  %v645_v54 = vmul.f32 %v463_v50, %v463_v50  ;;  %592 = vst [vmem:[%s1422_s20 + $0xa8] sm:$0xff] %v1457_v51 }
 0x13b   : > { %v958_v55 = vpop.f32.mrf.mxu0  ;;  %v1462_v56 = vpop.f32.mrf.mxu1 }
 0x13c   : > { %v608_v58 = vadd.f32 %v954_v35, %v607_v53  ;;  %v676_v59 = vadd.f32 %v675_v52, %v645_v54  ;;  %581 = vst [vmem:[%s1422_s20 + $0x50] sm:$0xff] %v958_v55  ;;  %597 = vst [vmem:[%s1422_s20 + $0xd0] sm:$0xff] %v1462_v56  ;;  %v650_v13 = vmul.f32 %v958_v55, %v958_v55 }
 0x13d   : > { %v476_v60 = vpop.f32.mrf.mxu0  ;;  %v1467_v61 = vpop.f32.mrf.mxu1 }
 0x13e   : > { %v677_v63 = vadd.f32 %v676_v59, %v646_v57  ;;  %579 = vst [vmem:[%s1422_s20 + $0x40] sm:$0xff] %v476_v60  ;;  %v609_v0 = vadd.f32 %v955_v45, %v608_v58  ;;  %595 = vst [vmem:[%s1422_s20 + $0xc0] sm:$0xff] %v1467_v61  ;;  %v648_v4 = vmul.f32 %v476_v60, %v476_v60 }
 0x13f   : > { %v959_v1 = vpop.f32.mrf.mxu0  ;;  %v1472_v2 = vpop.f32.mrf.mxu1 }
 0x140   : > { %v610_v3 = vadd.f32 %v609_v0, %v476_v60  ;;  %v678_v5 = vadd.f32 %v677_v63, %v647_v62  ;;  %582 = vst [vmem:[%s1422_s20 + $0x58] sm:$0xff] %v959_v1  ;;  %598 = vst [vmem:[%s1422_s20 + $0xd8] sm:$0xff] %v1472_v2  ;;  %v651_v18 = vmul.f32 %v959_v1, %v959_v1 }
 0x141   : > { %v479_v6 = vpop.f32.mrf.mxu0  ;;  %v1477_v7 = vpop.f32.mrf.mxu1 }
 0x142   : > { %v679_v8 = vadd.f32 %v678_v5, %v648_v4  ;;  %580 = vst [vmem:[%s1422_s20 + $0x48] sm:$0xff] %v479_v6  ;;  %v611_v9 = vadd.f32 %v610_v3, %v479_v6  ;;  %v649_v10 = vmul.f32 %v479_v6, %v479_v6  ;;  %596 = vst [vmem:[%s1422_s20 + $0xc8] sm:$0xff] %v1477_v7 }
 0x143   : > { %v962_v11 = vpop.f32.mrf.mxu0  ;;  %v1482_v12 = vpop.f32.mrf.mxu1 }
 0x144   : > { %v612_v14 = vadd.f32 %v958_v55, %v611_v9  ;;  %v680_v15 = vadd.f32 %v679_v8, %v649_v10  ;;  %585 = vst [vmem:[%s1422_s20 + $0x70] sm:$0xff] %v962_v11  ;;  %601 = vst [vmem:[%s1422_s20 + $0xf0] sm:$0xff] %v1482_v12 }
 0x145   : > { %v492_v16 = vpop.f32.mrf.mxu0  ;;  %v1489_v17 = vpop.f32.mrf.mxu1 }
 0x146   : > { %v681_v19 = vadd.f32 %v680_v15, %v650_v13  ;;  %583 = vst [vmem:[%s1422_s20 + $0x60] sm:$0xff] %v492_v16  ;;  %v613_v20 = vadd.f32 %v959_v1, %v612_v14  ;;  %599 = vst [vmem:[%s1422_s20 + $0xe0] sm:$0xff] %v1489_v17  ;;  %v652_v24 = vmul.f32 %v492_v16, %v492_v16 }
 0x147   : > { %v963_v21 = vpop.f32.mrf.mxu0  ;;  %v1494_v22 = vpop.f32.mrf.mxu1 }
 0x148   : > { %v614_v23 = vadd.f32 %v613_v20, %v492_v16  ;;  %v682_v26 = vadd.f32 %v681_v19, %v651_v18  ;;  %586 = vst [vmem:[%s1422_s20 + $0x78] sm:$0xff] %v963_v21  ;;  %602 = vst [vmem:[%s1422_s20 + $0xf8] sm:$0xff] %v1494_v22 }
 0x149   : > { %v495_v28 = vpop.f32.mrf.mxu0  ;;  %v1506_v30 = vpop.f32.mrf.mxu1 }
 0x14a   : > { %v683_v32 = vadd.f32 %v682_v26, %v652_v24  ;;  %584 = vst [vmem:[%s1422_s20 + $0x68] sm:$0xff] %v495_v28  ;;  %v615_v33 = vadd.f32 %v614_v23, %v495_v28  ;;  %v653_v34 = vmul.f32 %v495_v28, %v495_v28  ;;  %600 = vst [vmem:[%s1422_s20 + $0xe8] sm:$0xff] %v1506_v30 }
 0x14b   : > { %1153 = shalt.err (!%p1150_p0)
}
 0x14c   : > { %s1154_s11 = scalar_lea.hbm %s1499_s23, 4096  ;;  %s1158_s30 = scalar_lea.hbm %s1625_s2, 53248 }
 0x14d   : > { %p1155_p5 = scmp.ne.s32.totalorder %s1499_s23, %s1154_s11  ;;  %p1159_p4 = scmp.lt.s32.totalorder %s1499_s23, %s1625_s2 }
 0x14e   : > { %p1160_p6 = scmp.lt.s32.totalorder %s1158_s30, %s1154_s11 }
 0x14f   : > { %p1156_p2 = pnand %p1155_p5, %p1642_p10 }
 0x150   : > { %p1161_p8 = por %p1160_p6, %p1159_p4 }
 0x151   : > { %p1157_p1 = pneg %p1156_p2 }
 0x153   : > { %p1162_p3 = pnand %p1161_p8, %p1157_p1 }
 0x155   : > { %1165 = shalt.err (!%p1162_p3)
}
 0x156   : > { %s1245_s20 = smov 128   ;;  %s1246_s28 = smov 8   ;;  %v654_v35 = vmul.f32 %v962_v11, %v962_v11  ;;  %v616_v37 = vadd.f32 %v962_v11, %v615_v33  ;;  %v684_v38 = vadd.f32 %v683_v32, %v653_v34  ;;  %v655_v39 = vmul.f32 %v963_v21, %v963_v21 }
 0x157   : > { %1002 = dma.vmem_to_hbm [thread:$0]  (%p1642_p10), %s1501_s29, 4096, %s1499_s23, %s717_s25, %s1245_s20, %s1245_s20, %s1246_s28   ;;  %v656_v43 = vmul.f32 %v1427_v27, %v1427_v27  ;;  %v657_v48 = vmul.f32 %v1437_v31, %v1437_v31  ;;  %v658_v50 = vmul.f32 %v1420_v25, %v1420_v25  ;;  %v659_v54 = vmul.f32 %v1432_v29, %v1432_v29 }
 0x158   : > { %v617_v40 = vadd.f32 %v963_v21, %v616_v37  ;;  %v685_v42 = vadd.f32 %v684_v38, %v654_v35  ;;  %v660_v58 = vmul.f32 %v1447_v41, %v1447_v41  ;;  %v661_v62 = vmul.f32 %v1457_v51, %v1457_v51  ;;  %s874_s29 = sshll.u32 %s1389_s26, 3  ;;  %s903_s17 = sshll.u32 %s1289_s16, 7 }
 0x159   : > { %v664_v4 = vmul.f32 %v1467_v61, %v1467_v61  ;;  %v665_v8 = vmul.f32 %v1477_v7, %v1477_v7  ;;  %v668_v14 = vmul.f32 %v1489_v17, %v1489_v17  ;;  %v670_v18 = vmul.f32 %v1482_v12, %v1482_v12  ;;  %s214_s22 = scalar_lea.vmem [#allocation8], %s874_s29  ;;  %s1587_s9 = scalar_lea.hbm %s1626_s3, %s903_s17 }
 0x15a   : > { %v686_v44 = vadd.f32 %v685_v42, %v655_v39  ;;  %v618_v45 = vadd.f32 %v617_v40, %v1427_v27  ;;  %v709_v32 = vlaneseq  ;;  %s751_s23 = sshll.u32 %s214_s22, 4  ;;  %s722_s7 = scalar_lea.sflag [#allocation9], %s1389_s26  ;;  %s752_s23 = int_to_ptr.vmem [resolvable:$true] %s751_s23 }
 0x15b   : > { %s1166_s10 = scalar_lea.vmem %s752_s23, 128  ;;  %s1247_s16 = smov [#allocation8]  }
 0x15c   : > { %v619_v47 = vadd.f32 %v618_v45, %v1437_v31  ;;  %v687_v49 = vadd.f32 %v686_v44, %v656_v43  ;;  %v710_v37 = vshrl.u32 %v709_v32, 7  ;;  %p1167_p7 = scmp.ne.s32.totalorder %s752_s23, %s1166_s10  ;;  %s1170_s11 = sshll.u32 %s1247_s16, 4  ;;  %s1171_s11 = int_to_ptr.vmem [resolvable:$false] %s1170_s11 }
 0x15d   : > { %s1172_s21 = scalar_lea.vmem %s1171_s11, 256  ;;  %p1173_p12 = scmp.lt.s32.totalorder %s752_s23, %s1171_s11 }
 0x15e   : > { %v620_v52 = vadd.f32 %v1420_v25, %v619_v47  ;;  %v688_v53 = vadd.f32 %v687_v49, %v657_v48  ;;  %v662_v25 = vmul.f32 %v1442_v36, %v1442_v36  ;;  %vm712_vm0 = vcmp.eq.s32.totalorder %v710_v37, 1  ;;  %p1168_p9 = pnand %p1167_p7, %p1642_p10  ;;  %p1174_p13 = scmp.lt.s32.totalorder %s1172_s21, %s1166_s10 }
 0x15f   : > { %vm711_vm1 = vcmp.eq.s32.totalorder %v710_v37, 0 }
 0x160   : > { %v689_v55 = vadd.f32 %v688_v53, %v658_v50  ;;  %v621_v57 = vadd.f32 %v1432_v29, %v620_v52  ;;  %v663_v29 = vmul.f32 %v1452_v46, %v1452_v46  ;;  %p1169_p11 = pneg %p1168_p9  ;;  %p1175_p0 = por %p1174_p13, %p1173_p12 }
 0x162   : > { %v622_v27 = vadd.f32 %v621_v57, %v1447_v41  ;;  %v690_v59 = vadd.f32 %v689_v55, %v659_v54  ;;  %p1176_p5 = pnand %p1175_p0, %p1169_p11 }
 0x164   : > { %v691_v31 = vadd.f32 %v690_v59, %v660_v58  ;;  %v623_v60 = vadd.f32 %v622_v27, %v1457_v51 }
 0x166   : > { %v624_v63 = vadd.f32 %v1442_v36, %v623_v60  ;;  %v692_v0 = vadd.f32 %v691_v31, %v661_v62  ;;  %v666_v36 = vmul.f32 %v1462_v56, %v1462_v56 }
 0x168   : > { %v693_v1 = vadd.f32 %v692_v0, %v662_v25  ;;  %v625_v3 = vadd.f32 %v1452_v46, %v624_v63  ;;  %v667_v46 = vmul.f32 %v1472_v2, %v1472_v2 }
 0x16a   : > { %v626_v41 = vadd.f32 %v625_v3, %v1467_v61  ;;  %v694_v5 = vadd.f32 %v693_v1, %v663_v29 }
 0x16c   : > { %v695_v6 = vadd.f32 %v694_v5, %v664_v4  ;;  %v627_v51 = vadd.f32 %v626_v41, %v1477_v7 }
 0x16e   : > { %v628_v9 = vadd.f32 %v1462_v56, %v627_v51  ;;  %v696_v10 = vadd.f32 %v695_v6, %v665_v8  ;;  %v669_v56 = vmul.f32 %v1506_v30, %v1506_v30 }
 0x170   : > { %v697_v11 = vadd.f32 %v696_v10, %v666_v36  ;;  %v629_v13 = vadd.f32 %v1472_v2, %v628_v9  ;;  %v671_v2 = vmul.f32 %v1494_v22, %v1494_v22 }
 0x172   : > { %v630_v61 = vadd.f32 %v629_v13, %v1489_v17  ;;  %v698_v15 = vadd.f32 %v697_v11, %v667_v46 }
 0x174   : > { %v699_v16 = vadd.f32 %v698_v15, %v668_v14  ;;  %v631_v7 = vadd.f32 %v630_v61, %v1506_v30 }
 0x176   : > { %v632_v19 = vadd.f32 %v1482_v12, %v631_v7  ;;  %v700_v20 = vadd.f32 %v699_v16, %v669_v56 }
 0x178   : > { %v633_v21 = vadd.f32 %v1494_v22, %v632_v19  ;;  %v701_v17 = vadd.f32 %v700_v20, %v670_v18 }
 0x17a   : > { %v634_v23 = vrot.slane %v633_v21, 4  ;;  %v702_v24 = vadd.f32 %v701_v17, %v671_v2 }
 0x17c   : > { %v635_v26 = vadd.f32 %v634_v23, %v633_v21  ;;  %v703_v28 = vrot.slane %v702_v24, 4 }
 0x17e   : > { %v636_v33 = vrot.slane %v635_v26, 2  ;;  %v704_v30 = vadd.f32 %v703_v28, %v702_v24 }
 0x180   : > { %v637_v34 = vadd.f32 %v636_v33, %v635_v26  ;;  %v705_v35 = vrot.slane %v704_v30, 2 }
 0x182   : > { %v706_v12 = vadd.f32 %v705_v35, %v704_v30  ;;  %v638_v38 = vrot.slane %v637_v34, 1 }
 0x184   : > { %v707_v39 = vrot.slane %v706_v12, 1  ;;  %v639_v40 = vadd.f32 %v638_v38, %v637_v34 }
 0x186   : > { %v708_v22 = vadd.f32 %v707_v39, %v706_v12 }
 0x188   : > { %v713_v42 = vsel %vm712_vm0, %v708_v22, 0.0 }
 0x189   : > { %v714_v43 = vsel %vm711_vm1, %v639_v40, %v713_v42 }
 0x18a   : > { %715 = vst [vmem:[%s214_s22] sm:$0xff] %v714_v43 }
 0x18b   : > { %1179 = shalt.err (!%p1176_p5)
}
 0x18c   : > { %s1180_s27 = scalar_lea.hbm %s1587_s9, 128  ;;  %s1184_s4 = scalar_lea.hbm %s1626_s3, 1664 }
 0x18d   : > { %p1181_p2 = scmp.ne.s32.totalorder %s1587_s9, %s1180_s27  ;;  %p1185_p6 = scmp.lt.s32.totalorder %s1587_s9, %s1626_s3 }
 0x18e   : > { %p1186_p8 = scmp.lt.s32.totalorder %s1184_s4, %s1180_s27 }
 0x18f   : > { %p1182_p1 = pnand %p1181_p2, %p1642_p10 }
 0x190   : > { %p1187_p3 = por %p1186_p8, %p1185_p6 }
 0x191   : > { %p1183_p4 = pneg %p1182_p1 }
 0x193   : > { %p1188_p7 = pnand %p1187_p3, %p1183_p4 }
 0x195   : > { %1191 = shalt.err (!%p1188_p7)
}
 0x196   : > { %1003 = dma.vmem_to_hbm [thread:$0]  (%p1642_p10), %s752_s23, 128, %s1587_s9, %s722_s7  }
 0x197 PF: > { %p1024_p9 = scmp.ge.s32.totalorder %s1238_s15, 2  ;;  %s763_s28 = sand.u32 1, %s1226_s12  }
 0x198   : > { %p1643_p11 = scmp.ne.s32.totalorder %s1632_s19, 0  ;;  %s764_s29 = scalar_lea.sflag [#allocation4], %s763_s28 }
 0x19a   : > { %p1015_p12 = pnand %p1024_p9, %p1643_p11 }
 0x19c   : > { %p1016_p13 = pneg %p1015_p12 }
 0x19e   : > { %1217 = dma.done.wait (%p1016_p13), %s764_s29, 4096  }
 0x19f   : > { %1219 = vsyncadd (%p1016_p13), %s764_s29, 4294963200  ;;  %s773_s17 = scalar_lea.sflag [#allocation9], %s763_s28 }
 0x1a0   : > { %1221 = dma.done.wait (%p1016_p13), %s773_s17, 128  }
 0x1a1   : > { %1223 = vsyncadd (%p1016_p13), %s773_s17, 4294967168  ;;  %p21_p10 = scmp.ge.s32.totalorder %s1321_s24, 15   ;;  %s1644_s12 = smov %s1230_s13 }
 0x1a2   : > { %s1645_s13 = smov %s1234_s14  ;;  %s1646_s14 = smov %s1341_s5 }
 0x1a3   : > { %s1647_s15 = smov %s1321_s24  ;;  %23 = sbr.rel (!%p21_p10) target bundleno = 8 (0x8), region = 94 }
 0x1a8   :  { %778 = vsyncpa [#allocation3], 1 }
 0x1a9   :  { %780 = vsyncpa [#allocation3 + $0x1], 1 }
 0x1aa   :  { %781 = vsyncpa [#allocation6], 1 }
 0x1ab   :  { %782 = vsyncpa [#allocation4], 1 }
 0x1ac   :  { %784 = vsyncpa [#allocation4 + $0x1], 1 }
 0x1ad   :  { %785 = vsyncpa [#allocation9], 1 }
 0x1ae   :  { %787 = vsyncpa [#allocation9 + $0x1], 1 }

</bundles_post_ra>
